<compile_context>
chip_gen: v5e
topology: v5e:2x2
jax: 0.10.0
libtpu: 0.0.40
codegen_flags: <defaults>
</compile_context>

<pallas_src>
import math

import jax
import jax.numpy as jnp
from jax.experimental import pallas as pl
from jax.experimental.pallas import tpu as pltpu


def _swizzle(x):
    """(groups, C, N) -> (groups, N, C) minor-dim swap inside the kernel."""
    if hasattr(pltpu, "einshape"):          # lane-layout-aware path
        return pltpu.einshape("gcn->gnc", x)
    return jnp.swapaxes(x, 1, 2)            # minor-most 2D transpose per slab


def _image_to_word_kernel(x_ref, w1_ref, b1_ref, w2_ref, b2_ref, out_ref):
    x = x_ref[...]                           # (TM, C, N) native channel-major
    tm, c, n = x.shape
    # In-kernel (C,N)->(N,C) swizzle rides the XLU; flatten (group, vec) rows.
    x = _swizzle(x).reshape(tm * n, c)       # (TM*N, C)

    # layer 1: 1x1 conv (BN folded) + LeakyReLU(0.01). Default MXU precision,
    # f32 accumulation.
    h1 = jnp.dot(x, w1_ref[...], preferred_element_type=jnp.float32) + b1_ref[...]
    h1 = jnp.maximum(h1, 0.01 * h1)

    # layer 2: 1x1 conv (BN folded) + LeakyReLU(0.01)
    h2 = jnp.dot(h1, w2_ref[...], preferred_element_type=jnp.float32) + b2_ref[...]
    h2 = jnp.maximum(h2, 0.01 * h2)

    # per-group mean over the vec_num positions (sublane reduction)
    h2 = h2.reshape(tm, n, h2.shape[-1])
    out_ref[...] = (jnp.sum(h2, axis=1) * (1.0 / n)).astype(out_ref.dtype)


def _fold_bn(w, gamma, beta, mean, var, eps=1e-5):
    """Fold inference-mode BatchNorm2d into a 1x1-conv weight (out_c, in_c)."""
    scale = gamma / jnp.sqrt(var + eps)                   # (out_c,)
    w_f = w * scale[:, None]                              # (out_c, in_c)
    b_f = beta - mean * scale                             # (out_c,)
    return w_f, b_f


def _choose_tiling(m, n, max_rows=8192):
    """Pick (groups per grid step, padded group count).

    Blocks are 8-aligned on the group axis (sublane-aligned output blocks),
    sized so tm * n rows stay within a lane-padding-aware VMEM budget, and we
    prefer >= 2 grid steps so the "parallel" axis can span both v7x cores.
    """
    cap = max(8, min(m, max(1, max_rows // max(n, 1))) // 8 * 8)
    if m > cap:
        tm = cap
        m_pad = -(-m // tm) * tm             # pad M up to a multiple of tm
        return tm, m_pad
    # Whole problem fits in one step; still split if an 8-aligned divisor
    # exists so both TensorCores get work on megacore parts.
    for tm in range(m // 2 // 8 * 8, 7, -8):
        if m % tm == 0:
            return tm, m
    return m, m                              # single full-extent block


def _vmem_limit_bytes(tm, c, n, h1, h2):
    """Scoped-VMEM request for one block (lane-padded, incl. double buffers)."""
    lane = 128
    pad = lambda d: -(-d // lane) * lane
    rows = tm * n
    need = 4 * (
        2 * tm * c * pad(n)                         # x block (double buffered)
        + rows * pad(c)                             # swizzled activations
        + rows * pad(h1) + rows * pad(h2)           # layer-1 / layer-2 outputs
        + 2 * tm * pad(h2)                          # output block (double buf)
        + 2 * (c * pad(h1) + h1 * pad(h2) + pad(h1) + pad(h2))  # weights/bias
    )
    # Headroom for compiler temporaries, capped well under every generation's
    # physical VMEM (64 MiB/TC on v7x, 128 MiB on v5e/v6e).
    return int(min(max(2 * need, 32 << 20), 56 << 20))


def image_to_word(proto_node, params):
    """proto_node: (B, G, in_c, vec_num) f32 -> (B, G, base_c) f32."""
    (w1, g1, be1, m1, v1, w2, g2, be2, m2, v2) = params
    B, G, C, N = proto_node.shape
    H1, H2 = w1.shape[0], w2.shape[0]
    M = B * G

    # Host-side glue: exact BN folding (eval mode). No activation transpose —
    # the (M, C, N) view below is a free reshape of the contiguous input.
    w1f, b1 = _fold_bn(w1, g1, be1, m1, v1)
    w2f, b2 = _fold_bn(w2, g2, be2, m2, v2)
    w1t = w1f.T                                            # (C, H1)
    w2t = w2f.T                                            # (H1, H2)
    b1r = b1.reshape(1, H1)
    b2r = b2.reshape(1, H2)

    x = proto_node.reshape(M, C, N)
    tm, m_pad = _choose_tiling(M, N)
    if m_pad != M:
        x = jnp.pad(x, ((0, m_pad - M), (0, 0), (0, 0)))   # zero groups, sliced off below
    grid = (m_pad // tm,)

    flops = 2 * M * N * (C * H1 + H1 * H2)
    bytes_accessed = 4 * (m_pad * C * N + m_pad * H2 + C * H1 + H1 * H2 + H1 + H2)

    out = pl.pallas_call(
        _image_to_word_kernel,
        out_shape=jax.ShapeDtypeStruct((m_pad, H2), jnp.float32),
        grid=grid,
        in_specs=[
            pl.BlockSpec((tm, C, N), lambda t: (t, 0, 0)),   # activations (native layout)
            pl.BlockSpec((C, H1), lambda t: (0, 0)),         # folded W1^T
            pl.BlockSpec((1, H1), lambda t: (0, 0)),         # folded b1
            pl.BlockSpec((H1, H2), lambda t: (0, 0)),        # folded W2^T
            pl.BlockSpec((1, H2), lambda t: (0, 0)),         # folded b2
        ],
        out_specs=pl.BlockSpec((tm, H2), lambda t: (t, 0)),
        compiler_params=pltpu.CompilerParams(
            dimension_semantics=("parallel",),
            vmem_limit_bytes=_vmem_limit_bytes(tm, C, N, H1, H2)),
        cost_estimate=pl.CostEstimate(flops=flops, transcendentals=0,
                                      bytes_accessed=bytes_accessed),
    )(x, w1t, b1r, w2t, b2r)
    return out[:M].reshape(B, G, H2)


def make_params(in_c, base_c, key):
    """Deterministic synthetic parameters matching the module's __init__ shapes."""
    H1, H2 = base_c * 2, base_c
    ks = jax.random.split(key, 10)
    # Conv2d 1x1 weights (out_c, in_c, 1, 1) stored as (out_c, in_c), bias=False
    w1 = jax.random.normal(ks[0], (H1, in_c), jnp.float32) / math.sqrt(in_c)
    w2 = jax.random.normal(ks[1], (H2, H1), jnp.float32) / math.sqrt(H1)
    # BatchNorm2d gamma / beta / running_mean / running_var
    g1 = 1.0 + 0.1 * jax.random.normal(ks[2], (H1,), jnp.float32)
    be1 = 0.1 * jax.random.normal(ks[3], (H1,), jnp.float32)
    m1 = 0.1 * jax.random.normal(ks[4], (H1,), jnp.float32)
    v1 = jnp.abs(1.0 + 0.1 * jax.random.normal(ks[5], (H1,), jnp.float32))
    g2 = 1.0 + 0.1 * jax.random.normal(ks[6], (H2,), jnp.float32)
    be2 = 0.1 * jax.random.normal(ks[7], (H2,), jnp.float32)
    m2 = 0.1 * jax.random.normal(ks[8], (H2,), jnp.float32)
    v2 = jnp.abs(1.0 + 0.1 * jax.random.normal(ks[9], (H2,), jnp.float32))
    # TODO(synk): BatchNorm2d modeled in inference mode (running statistics);
    # training-mode batch stats and Dropout2d (dropout=0.0 here) are not modeled.
    return (w1, g1, be1, m1, v1, w2, g2, be2, m2, v2)


def reference(proto_node, params):
    """Plain-JAX replica of the PyTorch forward (eval mode, dropout=0, f32)."""
    (w1, g1, be1, m1, v1, w2, g2, be2, m2, v2) = params
    B, G, C, N = proto_node.shape
    hp = jax.lax.Precision.HIGHEST
    eps = 1e-5
    x = jnp.transpose(proto_node.reshape(B * G, C, N), (0, 2, 1))   # (M, N, C)
    h = jnp.einsum('mnc,hc->mnh', x, w1, precision=hp)
    h = (h - m1) / jnp.sqrt(v1 + eps) * g1 + be1
    h = jnp.where(h > 0, h, 0.01 * h)
    h = jnp.einsum('mnh,kh->mnk', h, w2, precision=hp)
    h = (h - m2) / jnp.sqrt(v2 + eps) * g2 + be2
    h = jnp.where(h > 0, h, 0.01 * h)
    return jnp.mean(h, axis=1).reshape(B, G, -1)


if __name__ == "__main__":
    B, G, in_c, vec_num, base_c = 2, 4, 8, 16, 32

    key = jax.random.PRNGKey(0)
    k_x, k_p = jax.random.split(key, 2)
    proto_node = jax.random.normal(k_x, (B, G, in_c, vec_num), jnp.float32)
    params = make_params(in_c, base_c, k_p)

    out = image_to_word(proto_node, params)
    out = jax.block_until_ready(out)

    ref = reference(proto_node, params)
    assert out.shape == (B, G, base_c)
    # Kernel matmuls run at default (single-pass MXU) precision vs. the
    # HIGHEST-precision f32 reference, so the tolerance is bf16-level.
    assert jnp.allclose(out, ref, rtol=2e-2, atol=2e-2), (
        f"max abs err {jnp.max(jnp.abs(out - ref))}")

    print("KERNEL_OK")
</pallas_src>

<mosaic_0001>
module attributes {stable_mosaic.version = 11 : i64} {
  func.func @_image_to_word_kernel(%arg0: i32, %arg1: memref<8x8x16xf32, #tpu.memory_space<vmem>>, %arg2: memref<8x64xf32, #tpu.memory_space<vmem>>, %arg3: memref<1x64xf32, #tpu.memory_space<vmem>>, %arg4: memref<64x32xf32, #tpu.memory_space<vmem>>, %arg5: memref<1x32xf32, #tpu.memory_space<vmem>>, %arg6: memref<8x32xf32, #tpu.memory_space<vmem>>) attributes {dimension_semantics = [#tpu.dimension_semantics<parallel>], iteration_bounds = array<i64: 1>, scalar_prefetch = 0 : i64, scratch_operands = 0 : i64, tpu.core_type = #tpu.core_type<tc>, window_params = [{transform_indices = @transform_0, window_bounds = array<i64: 8, 8, 16>}, {pipeline_mode = #tpu.pipeline_mode<synchronous>, transform_indices = @transform_1, window_bounds = array<i64: 8, 64>}, {pipeline_mode = #tpu.pipeline_mode<synchronous>, transform_indices = @transform_2, window_bounds = array<i64: 1, 64>}, {pipeline_mode = #tpu.pipeline_mode<synchronous>, transform_indices = @transform_3, window_bounds = array<i64: 64, 32>}, {pipeline_mode = #tpu.pipeline_mode<synchronous>, transform_indices = @transform_4, window_bounds = array<i64: 1, 32>}, {transform_indices = @transform_5, window_bounds = array<i64: 8, 32>}]} {
    %c0 = arith.constant 0 : index
    %c0_0 = arith.constant 0 : index
    %c0_1 = arith.constant 0 : index
    %0 = vector.load %arg1[%c0, %c0_0, %c0_1] : memref<8x8x16xf32, #tpu.memory_space<vmem>>, vector<8x8x16xf32>
    %1 = tpu.transpose %0, [0, 2, 1] : vector<8x8x16xf32> -> vector<8x16x8xf32>
    %2 = vector.shape_cast %1 : vector<8x16x8xf32> to vector<128x8xf32>
    %c0_2 = arith.constant 0 : index
    %c0_3 = arith.constant 0 : index
    %3 = vector.load %arg2[%c0_2, %c0_3] : memref<8x64xf32, #tpu.memory_space<vmem>>, vector<8x64xf32>
    %cst = arith.constant dense<0.000000e+00> : vector<128x64xf32>
    %4 = tpu.matmul %2, %3, %cst {dimension_numbers = #tpu.dot_dimension_numbers<[1], [0], [0], [1], [0, 0, 1, 1], [], []>} : vector<128x8xf32>, vector<8x64xf32>, vector<128x64xf32> -> vector<128x64xf32>
    %c0_4 = arith.constant 0 : index
    %c0_5 = arith.constant 0 : index
    %5 = vector.load %arg3[%c0_4, %c0_5] : memref<1x64xf32, #tpu.memory_space<vmem>>, vector<1x64xf32>
    %6 = vector.broadcast %5 : vector<1x64xf32> to vector<128x64xf32>
    %7 = arith.addf %4, %6 : vector<128x64xf32>
    %cst_6 = arith.constant 0.00999999977 : f32
    %8 = vector.broadcast %cst_6 : f32 to vector<128x64xf32>
    %9 = arith.mulf %8, %7 : vector<128x64xf32>
    %10 = arith.maximumf %7, %9 : vector<128x64xf32>
    %c0_7 = arith.constant 0 : index
    %c0_8 = arith.constant 0 : index
    %11 = vector.load %arg4[%c0_7, %c0_8] : memref<64x32xf32, #tpu.memory_space<vmem>>, vector<64x32xf32>
    %cst_9 = arith.constant dense<0.000000e+00> : vector<128x32xf32>
    %12 = tpu.matmul %10, %11, %cst_9 {dimension_numbers = #tpu.dot_dimension_numbers<[1], [0], [0], [1], [0, 0, 1, 1], [], []>} : vector<128x64xf32>, vector<64x32xf32>, vector<128x32xf32> -> vector<128x32xf32>
    %c0_10 = arith.constant 0 : index
    %c0_11 = arith.constant 0 : index
    %13 = vector.load %arg5[%c0_10, %c0_11] : memref<1x32xf32, #tpu.memory_space<vmem>>, vector<1x32xf32>
    %14 = vector.broadcast %13 : vector<1x32xf32> to vector<128x32xf32>
    %15 = arith.addf %12, %14 : vector<128x32xf32>
    %cst_12 = arith.constant 0.00999999977 : f32
    %16 = vector.broadcast %cst_12 : f32 to vector<128x32xf32>
    %17 = arith.mulf %16, %15 : vector<128x32xf32>
    %18 = arith.maximumf %15, %17 : vector<128x32xf32>
    %19 = vector.shape_cast %18 : vector<128x32xf32> to vector<8x16x32xf32>
    %cst_13 = arith.constant dense<0.000000e+00> : vector<8x32xf32>
    %20 = vector.multi_reduction <add>, %19, %cst_13 [1] : vector<8x16x32xf32> to vector<8x32xf32>
    %cst_14 = arith.constant 6.250000e-02 : f32
    %21 = vector.broadcast %cst_14 : f32 to vector<8x32xf32>
    %22 = arith.mulf %20, %21 : vector<8x32xf32>
    %c0_15 = arith.constant 0 : index
    %c0_16 = arith.constant 0 : index
    %23 = vector.load %arg6[%c0_15, %c0_16] : memref<8x32xf32, #tpu.memory_space<vmem>>, vector<8x32xf32>
    tpu.vector_store %arg6[%c0_15, %c0_16], %22 {strides = array<i32>} : memref<8x32xf32, #tpu.memory_space<vmem>>, vector<8x32xf32>,
    return
  }
  func.func @transform_0(%arg0: i32) -> (i32, i32, i32) {
    %c0_i32 = arith.constant 0 : i32
    %c0_i32_0 = arith.constant 0 : i32
    %c0_i32_1 = arith.constant 0 : i32
    return %arg0, %c0_i32, %c0_i32_0 : i32, i32, i32
  }
  func.func @transform_1(%arg0: i32) -> (i32, i32) {
    %c0_i32 = arith.constant 0 : i32
    %c0_i32_0 = arith.constant 0 : i32
    %c0_i32_1 = arith.constant 0 : i32
    return %c0_i32, %c0_i32_0 : i32, i32
  }
  func.func @transform_2(%arg0: i32) -> (i32, i32) {
    %c0_i32 = arith.constant 0 : i32
    %c0_i32_0 = arith.constant 0 : i32
    %c0_i32_1 = arith.constant 0 : i32
    return %c0_i32, %c0_i32_0 : i32, i32
  }
  func.func @transform_3(%arg0: i32) -> (i32, i32) {
    %c0_i32 = arith.constant 0 : i32
    %c0_i32_0 = arith.constant 0 : i32
    %c0_i32_1 = arith.constant 0 : i32
    return %c0_i32, %c0_i32_0 : i32, i32
  }
  func.func @transform_4(%arg0: i32) -> (i32, i32) {
    %c0_i32 = arith.constant 0 : i32
    %c0_i32_0 = arith.constant 0 : i32
    %c0_i32_1 = arith.constant 0 : i32
    return %c0_i32, %c0_i32_0 : i32, i32
  }
  func.func @transform_5(%arg0: i32) -> (i32, i32) {
    %c0_i32 = arith.constant 0 : i32
    %c0_i32_0 = arith.constant 0 : i32
    return %arg0, %c0_i32 : i32, i32
  }
}

</mosaic_0001>

<bundles_post_ra>
// kernel: tpu_custom_call.1
= control target key start
LH: loop header
LB: loop body
LE: loop exit
PB: predicated region body
PF: predicated region fallthrough
CT: control target
= control target key end

     0   :  { %s970_s0 = inlined_call_operand.vmem [shape: f32[8,8,16], index: 0, kind: input, shape index: {}]   ;;  %s971_s1 = inlined_call_operand.vmem [shape: f32[8,64], index: 1, kind: input, shape index: {}]   ;;  %s972_s2 = inlined_call_operand.vmem [shape: f32[1,64], index: 2, kind: input, shape index: {}]   ;;  %s973_s3 = inlined_call_operand.vmem [shape: f32[64,32], index: 3, kind: input, shape index: {}]   ;;  %s974_s4 = inlined_call_operand.vmem [shape: f32[1,32], index: 4, kind: input, shape index: {}]   ;;  %s975_s5 = inlined_call_operand.hbm [shape: f32[8,32], index: 5, kind: output, shape index: {}]  }
   0x1   :  { %v21_v0 = vld [vmem:[%s970_s0] sm:$0xff]  ;;  %v23_v1 = vld [vmem:[%s970_s0 + $0x10] sm:$0xff] }
   0x2   :  { %29 = vxpose.xlu0.b32.start.end [1/1] (short) (narrow) %v21_v0, 16  ;;  %93 = vxpose.xlu1.b32.start.end [1/1] (short) (narrow) %v23_v1, 16  ;;  %v25_v2 = vld [vmem:[%s970_s0 + $0x20] sm:$0xff] }
   0x3   :  { %157 = vxpose.xlu2.b32.start.end [1/1] (short) (narrow) %v25_v2, 16  ;;  %v285_v3 = vld [vmem:[%s971_s1] sm:$0xff] }
   0x4   :  { %354 = vmatpush.msra.mxu0 %v285_v3  ;;  %747 = vmatpush.msra.mxu3 %v285_v3 }
   0x5   :  { %10 = vsyncpa [#allocation3], 0  ;;  %v22_v4 = vld [vmem:[%s970_s0 + $0x8] sm:$0xff]  ;;  %v24_v5 = vld [vmem:[%s970_s0 + $0x18] sm:$0xff]  ;;  %vm290_vm0 = vcmask 64512   ;;  %vm448_vm1 = vcmask 523264  }
   0x6   :  { %v26_v6 = vld [vmem:[%s970_s0 + $0x28] sm:$0xff]  ;;  %v27_v7 = vld [vmem:[%s970_s0 + $0x30] sm:$0xff]  ;;  %v28_v8 = vld [vmem:[%s970_s0 + $0x38] sm:$0xff]  ;;  %vm594_vm2 = vcmask 261120   ;;  %vm683_vm3 = vcmask 1041409   ;;  %vm685_vm4 = vcmask 1042434  }
   0x7   :  { %v443_v19 = vld [vmem:[%s973_s3 + $0x38] sm:$0xff]  ;;  %v442_v20 = vld [vmem:[%s973_s3 + $0x30] sm:$0xff]  ;;  %v441_v22 = vld [vmem:[%s973_s3 + $0x28] sm:$0xff]  ;;  %vm687_vm5 = vcmask 1043459   ;;  %vm689_vm6 = vcmask 1044484   ;;  %vm691_vm7 = vcmask 1045509  }
   0x8   :  { %505 = vmatpush.msra.mxu1 %v443_v19  ;;  %748 = vmatpush.msra.mxu2 %v443_v19  ;;  %v440_v24 = vld [vmem:[%s973_s3 + $0x20] sm:$0xff]  ;;  %v439_v29 = vld [vmem:[%s973_s3 + $0x18] sm:$0xff]  ;;  %v438_v30 = vld [vmem:[%s973_s3 + $0x10] sm:$0xff]  ;;  %vm693_vm8 = vcmask 1046534   ;;  %s706_s30 = sshll.u32 %s975_s5, 4  ;;  %vm695_vm9 = vcmask 1047559   ;;  %s707_s30 = int_to_ptr.hbm [resolvable:$true] %s706_s30 }
   0x9   :  { %749 = vmatpush.msrb.mxu3 %v443_v19  ;;  %v437_v31 = vld [vmem:[%s973_s3 + $0x8] sm:$0xff]  ;;  %v436_v32 = vld [vmem:[%s973_s3] sm:$0xff] }
   0xa   :  { %506 = vmatpush.msra.mxu1 %v442_v20  ;;  %750 = vmatpush.msra.mxu2 %v442_v20  ;;  %v895_v33 = vld [vmem:[%s972_s2] ss:$0 sm:$0xff] }
   0xb   :  { %751 = vmatpush.msrb.mxu3 %v442_v20 }
   0xc   :  { %507 = vmatpush.msra.mxu1 %v441_v22  ;;  %752 = vmatpush.msra.mxu2 %v441_v22 }
   0xd   :  { %753 = vmatpush.msrb.mxu3 %v441_v22 }
   0xe   :  { %508 = vmatpush.msra.mxu1 %v440_v24  ;;  %754 = vmatpush.msra.mxu2 %v440_v24 }
   0xf   :  { %755 = vmatpush.msrb.mxu3 %v440_v24 }
  0x10   :  { %509 = vmatpush.msra.mxu1 %v439_v29  ;;  %756 = vmatpush.msra.mxu2 %v439_v29 }
  0x11   :  { %757 = vmatpush.msrb.mxu3 %v439_v29 }
  0x12   :  { %61 = vxpose.xlu0.b32.start.end [1/1] (short) (narrow) %v22_v4, 16  ;;  %125 = vxpose.xlu1.b32.start.end [1/1] (short) (narrow) %v24_v5, 16 }
  0x13   :  { %189 = vxpose.xlu2.b32.start.end [1/1] (short) (narrow) %v26_v6, 16  ;;  %510 = vmatpush.msra.mxu1 %v438_v30 }
  0x14   :  { %758 = vmatpush.msra.mxu2 %v438_v30  ;;  %759 = vmatpush.msrb.mxu3 %v438_v30 }
  0x15   :  { %511 = vmatpush.msra.mxu1 %v437_v31 }
  0x16   :  { %760 = vmatpush.msra.mxu2 %v437_v31  ;;  %761 = vmatpush.msrb.mxu3 %v437_v31 }
  0x17   :  { %512 = vmatpush.msra.mxu1 %v436_v32 }
  0x18   :  { %762 = vmatpush.msra.mxu2 %v436_v32  ;;  %763 = vmatpush.msrb.mxu3 %v436_v32 }
  0x22   :  { %221 = vxpose.xlu0.b32.start.end [1/1] (short) (narrow) %v27_v7, 16  ;;  %253 = vxpose.xlu1.b32.start.end [1/1] (short) (narrow) %v28_v8, 16 }
  0x9c   :  { %v173_v11 = vpop.trf.xlu2 }
  0xa4   :  { %v174_v14 = vpop.trf.xlu2 }
  0xa5   :  { %724 = vmatmul.msk.f32.vlgmr.msra.gmra.mxu3 %vm290_vm0, %v174_v14 }
  0xa6   :  { %v45_v9 = vpop.trf.xlu0  ;;  %v109_v12 = vpop.trf.xlu1 }
  0xa7   :  { %715 = vmatmul.msk.f32.vlgmr.msra.gmra.mxu0 %vm290_vm0, %v45_v9 }
  0xac   :  { %v205_v17 = vpop.trf.xlu2 }
  0xad   :  { %725 = vmatmul.msk.f32.gmra.mxu3 %vm290_vm0, %v205_v17 }
  0xae   :  { %v46_v10 = vpop.trf.xlu0  ;;  %v110_v16 = vpop.trf.xlu1 }
  0xaf   :  { %716 = vmatmul.msk.f32.gmra.mxu0 %vm290_vm0, %v46_v10 }
  0xb4   :  { %v206_v18 = vpop.trf.xlu2 }
  0xb5   :  { %726 = vmatmul.msk.f32.gmra.mxu3 %vm290_vm0, %v206_v18 }
  0xb6   :  { %v77_v13 = vpop.trf.xlu0  ;;  %v141_v21 = vpop.trf.xlu1 }
  0xb7   :  { %717 = vmatmul.msk.f32.gmra.mxu0 %vm290_vm0, %v77_v13 }
  0xbe   :  { %v78_v15 = vpop.trf.xlu0  ;;  %v142_v25 = vpop.trf.xlu1 }
  0xbf   :  { %718 = vmatmul.msk.f32.gmra.mxu0 %vm290_vm0, %v78_v15 }
  0xc6   :  { %v237_v23 = vpop.trf.xlu0  ;;  %v269_v27 = vpop.trf.xlu1 }
  0xc7   :  { %719 = vmatmul.msk.f32.gmra.mxu0 %vm290_vm0, %v109_v12  ;;  %727 = vmatmul.msk.f32.gmra.mxu3 %vm290_vm0, %v237_v23 }
  0xce   :  { %v238_v26 = vpop.trf.xlu0  ;;  %v270_v28 = vpop.trf.xlu1 }
  0xcf   :  { %720 = vmatmul.msk.f32.gmra.mxu0 %vm290_vm0, %v110_v16  ;;  %728 = vmatmul.msk.f32.gmra.mxu3 %vm290_vm0, %v238_v26 }
  0xd7   :  { %721 = vmatmul.msk.f32.gmra.mxu0 %vm290_vm0, %v141_v21  ;;  %729 = vmatmul.msk.f32.gmra.mxu3 %vm290_vm0, %v269_v27 }
  0xdf   :  { %722 = vmatmul.msk.f32.gmra.mxu0 %vm290_vm0, %v142_v25  ;;  %730 = vmatmul.msk.f32.gmra.mxu3 %vm290_vm0, %v270_v28 }
  0xe7   :  { %723 = vmatmul.msk.f32.gmra.mxu0 %vm290_vm0, %v173_v11 }
 0x124   :  { %v356_v34 = vpop.f32.mrf.mxu0 }
 0x125   :  { %v357_v35 = vadd.f32 %v895_v33, %v356_v34 }
 0x127   :  { %v404_v36 = vmul.f32 0.01, %v357_v35 }
 0x128   :  { %v383_v49 = vpop.f32.mrf.mxu3 }
 0x129   :  { %v420_v37 = vmax.f32 %v357_v35, %v404_v36  ;;  %v384_v11 = vadd.f32 %v895_v33, %v383_v49 }
 0x12b   :  { %731 = vmatmul.msk.f32.vlgmr.msra.gmra.mxu1 %vm448_vm1, %v420_v37  ;;  %v413_v13 = vmul.f32 0.01, %v384_v11 }
 0x12c   :  { %v359_v38 = vpop.f32.mrf.mxu0 }
 0x12d   :  { %v360_v39 = vadd.f32 %v895_v33, %v359_v38  ;;  %v429_v15 = vmax.f32 %v384_v11, %v413_v13 }
 0x12f   :  { %v405_v40 = vmul.f32 0.01, %v360_v39 }
 0x130   :  { %v386_v54 = vpop.f32.mrf.mxu3 }
 0x131   :  { %v421_v41 = vmax.f32 %v360_v39, %v405_v40  ;;  %v387_v16 = vadd.f32 %v895_v33, %v386_v54 }
 0x133   :  { %732 = vmatmul.msk.f32.gmra.mxu1 %vm448_vm1, %v421_v41  ;;  %v414_v19 = vmul.f32 0.01, %v387_v16 }
 0x134   :  { %v362_v42 = vpop.f32.mrf.mxu0 }
 0x135   :  { %v363_v43 = vadd.f32 %v895_v33, %v362_v42  ;;  %v430_v21 = vmax.f32 %v387_v16, %v414_v19 }
 0x137   :  { %v406_v44 = vmul.f32 0.01, %v363_v43 }
 0x138   :  { %v389_v59 = vpop.f32.mrf.mxu3 }
 0x139   :  { %v422_v45 = vmax.f32 %v363_v43, %v406_v44  ;;  %v390_v22 = vadd.f32 %v895_v33, %v389_v59 }
 0x13b   :  { %733 = vmatmul.msk.f32.gmra.mxu1 %vm448_vm1, %v422_v45  ;;  %v415_v23 = vmul.f32 0.01, %v390_v22 }
 0x13c   :  { %v365_v46 = vpop.f32.mrf.mxu0 }
 0x13d   :  { %v366_v47 = vadd.f32 %v895_v33, %v365_v46  ;;  %v431_v24 = vmax.f32 %v390_v22, %v415_v23 }
 0x13f   :  { %v407_v48 = vmul.f32 0.01, %v366_v47 }
 0x141   :  { %v423_v50 = vmax.f32 %v366_v47, %v407_v48 }
 0x143   :  { %734 = vmatmul.msk.f32.gmra.mxu1 %vm448_vm1, %v423_v50 }
 0x144   :  { %v368_v51 = vpop.f32.mrf.mxu0 }
 0x145   :  { %v369_v52 = vadd.f32 %v895_v33, %v368_v51 }
 0x147   :  { %v408_v53 = vmul.f32 0.01, %v369_v52 }
 0x149   :  { %v424_v55 = vmax.f32 %v369_v52, %v408_v53 }
 0x14a   :  { %v392_v0 = vpop.f32.mrf.mxu3 }
 0x14b   :  { %735 = vmatmul.msk.f32.gmra.mxu1 %vm448_vm1, %v424_v55  ;;  %v393_v25 = vadd.f32 %v895_v33, %v392_v0 }
 0x14c   :  { %v371_v56 = vpop.f32.mrf.mxu0 }
 0x14d   :  { %v372_v57 = vadd.f32 %v895_v33, %v371_v56  ;;  %v416_v26 = vmul.f32 0.01, %v393_v25 }
 0x14f   :  { %v409_v58 = vmul.f32 0.01, %v372_v57  ;;  %v432_v27 = vmax.f32 %v393_v25, %v416_v26 }
 0x151   :  { %v425_v60 = vmax.f32 %v372_v57, %v409_v58 }
 0x152   :  { %v395_v5 = vpop.f32.mrf.mxu3 }
 0x153   :  { %736 = vmatmul.msk.f32.gmra.mxu1 %vm448_vm1, %v425_v60  ;;  %v396_v28 = vadd.f32 %v895_v33, %v395_v5 }
 0x154   :  { %v374_v61 = vpop.f32.mrf.mxu0 }
 0x155   :  { %v375_v62 = vadd.f32 %v895_v33, %v374_v61  ;;  %v417_v29 = vmul.f32 0.01, %v396_v28 }
 0x157   :  { %v410_v63 = vmul.f32 0.01, %v375_v62  ;;  %v433_v30 = vmax.f32 %v396_v28, %v417_v29 }
 0x159   :  { %v426_v1 = vmax.f32 %v375_v62, %v410_v63 }
 0x15a   :  { %v398_v10 = vpop.f32.mrf.mxu3 }
 0x15b   :  { %737 = vmatmul.msk.f32.gmra.mxu1 %vm448_vm1, %v426_v1  ;;  %v399_v31 = vadd.f32 %v895_v33, %v398_v10 }
 0x15c   :  { %v377_v2 = vpop.f32.mrf.mxu0 }
 0x15d   :  { %v378_v3 = vadd.f32 %v895_v33, %v377_v2  ;;  %v418_v32 = vmul.f32 0.01, %v399_v31 }
 0x15f   :  { %v411_v4 = vmul.f32 0.01, %v378_v3  ;;  %v434_v34 = vmax.f32 %v399_v31, %v418_v32 }
 0x161   :  { %v427_v6 = vmax.f32 %v378_v3, %v411_v4 }
 0x162   :  { %v401_v14 = vpop.f32.mrf.mxu3 }
 0x163   :  { %738 = vmatmul.msk.f32.vlgmr.msra.gmra.mxu2 %vm448_vm1, %v427_v6  ;;  %v402_v17 = vadd.f32 %v895_v33, %v401_v14 }
 0x164   :  { %v380_v7 = vpop.f32.mrf.mxu0 }
 0x165   :  { %v381_v8 = vadd.f32 %v895_v33, %v380_v7  ;;  %v419_v18 = vmul.f32 0.01, %v402_v17  ;;  %v932_v33 = vld [vmem:[%s974_s4] ss:$0 sm:$0xff]  ;;  %s794_s4 = smov [#allocation2]  }
 0x166   :  { %s704_s27 = sshll.u32 %s794_s4, 4  ;;  %s705_s27 = int_to_ptr.vmem [resolvable:$true] %s704_s27 }
 0x167   :  { %v412_v9 = vmul.f32 0.01, %v381_v8  ;;  %v435_v20 = vmax.f32 %v402_v17, %v419_v18 }
 0x169   :  { %v428_v12 = vmax.f32 %v381_v8, %v412_v9  ;;  %746 = vmatmul.msk.f32.vlgmr.msrb.gmra.mxu3 %vm448_vm1, %v435_v20 }
 0x16b   :  { %739 = vmatmul.msk.f32.gmra.mxu2 %vm448_vm1, %v428_v12 }
 0x173   :  { %740 = vmatmul.msk.f32.gmra.mxu2 %vm448_vm1, %v429_v15 }
 0x17b   :  { %741 = vmatmul.msk.f32.gmra.mxu2 %vm448_vm1, %v430_v21 }
 0x183   :  { %742 = vmatmul.msk.f32.gmra.mxu2 %vm448_vm1, %v431_v24 }
 0x18b   :  { %743 = vmatmul.msk.f32.gmra.mxu2 %vm448_vm1, %v432_v27 }
 0x193   :  { %744 = vmatmul.msk.f32.gmra.mxu2 %vm448_vm1, %v433_v30 }
 0x19b   :  { %745 = vmatmul.msk.f32.gmra.mxu2 %vm448_vm1, %v434_v34 }
 0x1a8   :  { %v514_v35 = vpop.f32.mrf.mxu1 }
 0x1a9   :  { %v515_v51 = vadd.f32 %v932_v33, %v514_v35 }
 0x1ab   :  { %v562_v0 = vmul.f32 0.01, %v515_v51 }
 0x1ad   :  { %v578_v12 = vmax.f32 %v515_v51, %v562_v0 }
 0x1af   :  { %v595_v25 = vsel %vm594_vm2, %v578_v12, 0.0 }
 0x1b0   :  { %v517_v36 = vpop.f32.mrf.mxu1 }
 0x1b1   :  { %v518_v46 = vadd.f32 %v932_v33, %v517_v36 }
 0x1b3   :  { %v563_v56 = vmul.f32 0.01, %v518_v46 }
 0x1b5   :  { %v579_v8 = vmax.f32 %v518_v46, %v563_v56 }
 0x1b7   :  { %v596_v21 = vsel %vm594_vm2, %v579_v8, 0.0 }
 0x1b8   :  { %v520_v37 = vpop.f32.mrf.mxu1  ;;  %v597_v34 = vadd.f32 %v596_v21, %v595_v25 }
 0x1b9   :  { %v521_v49 = vadd.f32 %v932_v33, %v520_v37 }
 0x1bb   :  { %v564_v60 = vmul.f32 0.01, %v521_v49 }
 0x1bd   :  { %v580_v9 = vmax.f32 %v521_v49, %v564_v60 }
 0x1bf   :  { %v604_v22 = vsel %vm594_vm2, %v580_v9, 0.0 }
 0x1c0   :  { %v523_v38 = vpop.f32.mrf.mxu1 }
 0x1c1   :  { %v524_v45 = vadd.f32 %v932_v33, %v523_v38 }
 0x1c3   :  { %v565_v54 = vmul.f32 0.01, %v524_v45 }
 0x1c5   :  { %v581_v3 = vmax.f32 %v524_v45, %v565_v54 }
 0x1c7   :  { %v605_v15 = vsel %vm594_vm2, %v581_v3, 0.0 }
 0x1c8   :  { %v526_v40 = vpop.f32.mrf.mxu1  ;;  %v606_v26 = vadd.f32 %v605_v15, %v604_v22 }
 0x1c9   :  { %v527_v52 = vadd.f32 %v932_v33, %v526_v40 }
 0x1cb   :  { %v566_v1 = vmul.f32 0.01, %v527_v52 }
 0x1cd   :  { %v582_v13 = vmax.f32 %v527_v52, %v566_v1 }
 0x1cf   :  { %v613_v27 = vsel %vm594_vm2, %v582_v13, 0.0 }
 0x1d0   :  { %v529_v43 = vpop.f32.mrf.mxu1 }
 0x1d1   :  { %v530_v47 = vadd.f32 %v932_v33, %v529_v43  ;;  %v598_v43 = vrot.slane %v597_v34, 4 }
 0x1d3   :  { %v567_v57 = vmul.f32 0.01, %v530_v47 }
 0x1d5   :  { %v583_v6 = vmax.f32 %v530_v47, %v567_v57 }
 0x1d7   :  { %v614_v18 = vsel %vm594_vm2, %v583_v6, 0.0 }
 0x1d8   :  { %v532_v48 = vpop.f32.mrf.mxu1  ;;  %v615_v29 = vadd.f32 %v614_v18, %v613_v27 }
 0x1d9   :  { %v533_v55 = vadd.f32 %v932_v33, %v532_v48 }
 0x1db   :  { %v568_v4 = vmul.f32 0.01, %v533_v55 }
 0x1dd   :  { %v584_v16 = vmax.f32 %v533_v55, %v568_v4  ;;  %v599_v55 = vadd.f32 %v598_v43, %v597_v34 }
 0x1df   :  { %v622_v30 = vsel %vm594_vm2, %v584_v16, 0.0  ;;  %v600_v1 = vrot.slane %v599_v55, 2 }
 0x1e1   :  { %v601_v13 = vadd.f32 %v600_v1, %v599_v55 }
 0x1e6   :  { %v535_v39 = vpop.f32.mrf.mxu2 }
 0x1e7   :  { %v536_v50 = vadd.f32 %v932_v33, %v535_v39  ;;  %v607_v39 = vrot.slane %v606_v26, 4 }
 0x1e9   :  { %v569_v61 = vmul.f32 0.01, %v536_v50  ;;  %v608_v49 = vadd.f32 %v607_v39, %v606_v26 }
 0x1eb   :  { %v585_v10 = vmax.f32 %v536_v50, %v569_v61 }
 0x1ec   :  { %v559_v46 = vpop.f32.mrf.mxu3 }
 0x1ed   :  { %v623_v23 = vsel %vm594_vm2, %v585_v10, 0.0  ;;  %v560_v54 = vadd.f32 %v932_v33, %v559_v46 }
 0x1ee   :  { %v538_v41 = vpop.f32.mrf.mxu2  ;;  %v624_v35 = vadd.f32 %v623_v23, %v622_v30 }
 0x1ef   :  { %v539_v58 = vadd.f32 %v932_v33, %v538_v41  ;;  %v616_v41 = vrot.slane %v615_v29, 4  ;;  %v577_v0 = vmul.f32 0.01, %v560_v54 }
 0x1f1   :  { %v570_v7 = vmul.f32 0.01, %v539_v58  ;;  %v617_v51 = vadd.f32 %v616_v41, %v615_v29 }
 0x1f3   :  { %v586_v19 = vmax.f32 %v539_v58, %v570_v7  ;;  %v618_v61 = vrot.slane %v617_v51, 2 }
 0x1f5   :  { %v631_v36 = vsel %vm594_vm2, %v586_v19, 0.0  ;;  %v619_v10 = vadd.f32 %v618_v61, %v617_v51 }
 0x1f6   :  { %v541_v42 = vpop.f32.mrf.mxu2 }
 0x1f7   :  { %v542_v53 = vadd.f32 %v932_v33, %v541_v42  ;;  %v620_v21 = vrot.slane %v619_v10, 1 }
 0x1f9   :  { %v571_v2 = vmul.f32 0.01, %v542_v53 }
 0x1fb   :  { %v587_v14 = vmax.f32 %v542_v53, %v571_v2 }
 0x1fd   :  { %v632_v28 = vsel %vm594_vm2, %v587_v14, 0.0 }
 0x1fe   :  { %v544_v44 = vpop.f32.mrf.mxu2  ;;  %v633_v37 = vadd.f32 %v632_v28, %v631_v36 }
 0x1ff   :  { %v545_v62 = vadd.f32 %v932_v33, %v544_v44  ;;  %v625_v44 = vrot.slane %v624_v35, 4 }
 0x200   :  { %v634_v47 = vrot.slane %v633_v37, 4 }
 0x201   :  { %v572_v11 = vmul.f32 0.01, %v545_v62  ;;  %v626_v56 = vadd.f32 %v625_v44, %v624_v35 }
 0x202   :  { %v635_v57 = vadd.f32 %v634_v47, %v633_v37 }
 0x203   :  { %v588_v24 = vmax.f32 %v545_v62, %v572_v11  ;;  %v627_v2 = vrot.slane %v626_v56, 2  ;;  %v593_v11 = vmax.f32 %v560_v54, %v577_v0 }
 0x205   :  { %v640_v38 = vsel %vm594_vm2, %v588_v24, 0.0  ;;  %v628_v14 = vadd.f32 %v627_v2, %v626_v56  ;;  %v659_v22 = vsel %vm594_vm2, %v593_v11, 0.0 }
 0x206   :  { %v547_v59 = vpop.f32.mrf.mxu2 }
 0x207   :  { %v548_v63 = vadd.f32 %v932_v33, %v547_v59  ;;  %v609_v59 = vrot.slane %v608_v49, 2  ;;  %v629_v24 = vrot.slane %v628_v14, 1 }
 0x209   :  { %v573_v5 = vmul.f32 0.01, %v548_v63  ;;  %v610_v7 = vadd.f32 %v609_v59, %v608_v49  ;;  %v630_v35 = vadd.f32 %v629_v24, %v628_v14 }
 0x20b   :  { %v589_v17 = vmax.f32 %v548_v63, %v573_v5  ;;  %v636_v5 = vrot.slane %v635_v57, 2  ;;  %v611_v18 = vrot.slane %v610_v7, 1  ;;  %v670_v44 = vmul.f32 0.0625, %v630_v35 }
 0x20d   :  { %v641_v31 = vsel %vm594_vm2, %v589_v17, 0.0  ;;  %v637_v16 = vadd.f32 %v636_v5, %v635_v57  ;;  %v612_v28 = vadd.f32 %v611_v18, %v610_v7 }
 0x20e   :  { %v550_v20 = vpop.f32.mrf.mxu2  ;;  %v642_v40 = vadd.f32 %v641_v31, %v640_v38  ;;  %v621_v31 = vadd.f32 %v620_v21, %v619_v10 }
 0x20f   :  { %v551_v32 = vadd.f32 %v932_v33, %v550_v20  ;;  %v638_v27 = vrot.slane %v637_v16, 1  ;;  %v668_v38 = vmul.f32 0.0625, %v612_v28 }
 0x210   :  { %v643_v50 = vrot.slane %v642_v40, 4  ;;  %v669_v41 = vmul.f32 0.0625, %v621_v31 }
 0x211   :  { %v574_v42 = vmul.f32 0.01, %v551_v32  ;;  %v639_v37 = vadd.f32 %v638_v27, %v637_v16 }
 0x212   :  { %v644_v60 = vadd.f32 %v643_v50, %v642_v40 }
 0x213   :  { %v590_v52 = vmax.f32 %v551_v32, %v574_v42  ;;  %v671_v46 = vmul.f32 0.0625, %v639_v37 }
 0x214   :  { %v645_v8 = vrot.slane %v644_v60, 2 }
 0x215   :  { %v649_v62 = vsel %vm594_vm2, %v590_v52, 0.0 }
 0x216   :  { %v553_v45 = vpop.f32.mrf.mxu2  ;;  %v646_v19 = vadd.f32 %v645_v8, %v644_v60 }
 0x217   :  { %v554_v48 = vadd.f32 %v932_v33, %v553_v45 }
 0x218   :  { %v647_v29 = vrot.slane %v646_v19, 1 }
 0x219   :  { %v575_v53 = vmul.f32 0.01, %v554_v48 }
 0x21a   :  { %v648_v39 = vadd.f32 %v647_v29, %v646_v19 }
 0x21b   :  { %v591_v58 = vmax.f32 %v554_v48, %v575_v53 }
 0x21c   :  { %v672_v48 = vmul.f32 0.0625, %v648_v39 }
 0x21d   :  { %v650_v63 = vsel %vm594_vm2, %v591_v58, 0.0 }
 0x21e   :  { %v651_v3 = vadd.f32 %v650_v63, %v649_v62  ;;  %v556_v4 = vpop.f32.mrf.mxu2 }
 0x21f   :  { %v557_v6 = vadd.f32 %v932_v33, %v556_v4  ;;  %v602_v33 = vrot.slane %v601_v13, 1 }
 0x220   :  { %v652_v9 = vrot.slane %v651_v3, 4 }
 0x221   :  { %v576_v12 = vmul.f32 0.01, %v557_v6  ;;  %v603_v34 = vadd.f32 %v602_v33, %v601_v13 }
 0x222   :  { %v653_v15 = vadd.f32 %v652_v9, %v651_v3 }
 0x223   :  { %v592_v17 = vmax.f32 %v557_v6, %v576_v12  ;;  %v667_v43 = vmul.f32 0.0625, %v603_v34 }
 0x224   :  { %v654_v20 = vrot.slane %v653_v15, 2 }
 0x225   :  { %v658_v23 = vsel %vm594_vm2, %v592_v17, 0.0  ;;  %v684_v47 = vsel %vm683_vm3, %v668_v38, %v667_v43 }
 0x226   :  { %v655_v25 = vadd.f32 %v654_v20, %v653_v15  ;;  %v660_v26 = vadd.f32 %v659_v22, %v658_v23  ;;  %v686_v51 = vsel %vm685_vm4, %v669_v41, %v684_v47 }
 0x227   :  { %v688_v53 = vsel %vm687_vm5, %v670_v44, %v686_v51 }
 0x228   :  { %v661_v30 = vrot.slane %v660_v26, 4  ;;  %v656_v32 = vrot.slane %v655_v25, 1  ;;  %v690_v54 = vsel %vm689_vm6, %v671_v46, %v688_v53 }
 0x229   :  { %v692_v56 = vsel %vm691_vm7, %v672_v48, %v690_v54 }
 0x22a   :  { %v662_v36 = vadd.f32 %v661_v30, %v660_v26  ;;  %v657_v42 = vadd.f32 %v656_v32, %v655_v25 }
 0x22c   :  { %v663_v40 = vrot.slane %v662_v36, 2  ;;  %v673_v50 = vmul.f32 0.0625, %v657_v42 }
 0x22e   :  { %v664_v45 = vadd.f32 %v663_v40, %v662_v36  ;;  %v694_v57 = vsel %vm693_vm8, %v673_v50, %v692_v56 }
 0x230   :  { %v665_v49 = vrot.slane %v664_v45, 1 }
 0x232   :  { %v666_v52 = vadd.f32 %v665_v49, %v664_v45 }
 0x234   :  { %v674_v55 = vmul.f32 0.0625, %v666_v52 }
 0x236   :  { %v696_v58 = vsel %vm695_vm9, %v674_v55, %v694_v57 }
 0x237   :  { %698 = vst.msk [vmem:[#allocation2] sm:$0xff] %vm594_vm2, %v696_v58 }
 0x238   :  { %709 = dma.vmem_to_hbm [thread:$0]  %s705_s27, 128, %s707_s30, [#allocation3]  }
 0x239   :  { %792 = dma.done.wait [#allocation3], 128  }
 0x23a   :  { %793 = vsyncadd [#allocation3], 4294967168 }
 0x23b   :  { %714 = vsyncpa [#allocation3], 1 }

</bundles_post_ra>
